<compile_context>
chip_gen: v7x
topology: tpu7x:2x2x1
jax: 0.10.0
libtpu: 0.0.40
codegen_flags: <defaults>
</compile_context>

<pallas_src>
import functools
import math

import jax
import jax.numpy as jnp
from jax import lax
from jax.experimental import pallas as pl
from jax.experimental.pallas import tpu as pltpu

_SQRT_HALF = 1.0 / math.sqrt(2.0)
_TANH_C = math.sqrt(2.0 / math.pi)


def _gelu(x, approximate):
    if approximate:
        # tanh approximation: rides the EUP slot (nearly free when MXU/VPU bound).
        return 0.5 * x * (1.0 + jnp.tanh(_TANH_C * (x + 0.044715 * (x * x * x))))
    # PyTorch nn.GELU() default: exact erf-based GELU.
    return 0.5 * x * (1.0 + lax.erf(x * _SQRT_HALF))


# ----------------------------- kernels ---------------------------------------


def _mlp_kernel_resident(x_ref, w1_ref, b1_ref, w2_ref, b2_ref, o_ref, *, approximate):
    # Grid: (batch [parallel], HW tiles [parallel]).  Weights/biases resident.
    # x_ref : (1, dim, t_hw)   w1_ref: (mlp_dim, dim)   b1_ref: (mlp_dim, 1)
    # w2_ref: (dim, mlp_dim)   b2_ref: (dim, 1)         o_ref : (1, dim, t_hw)
    x = x_ref[0].astype(w1_ref.dtype)
    h = jnp.dot(w1_ref[...], x, preferred_element_type=jnp.float32)
    h = _gelu(h + b1_ref[...], approximate)
    # Dropout (p=0.1) is identity in eval mode.
    o = jnp.dot(w2_ref[...], h.astype(w2_ref.dtype), preferred_element_type=jnp.float32)
    o_ref[0] = (o + b2_ref[...]).astype(o_ref.dtype)


def _mlp_kernel_streaming(
    x_ref, w1_ref, b1_ref, w2_ref, b2_ref, o_ref, acc_ref, *, approximate
):
    # Grid: (batch [parallel], HW tiles [parallel], hidden chunks [arbitrary]).
    # x_ref : (1, dim, t_hw)   w1_ref: (tc, dim)    b1_ref: (tc, 1)
    # w2_ref: (dim, tc)        b2_ref: (dim, 1)     acc_ref: (dim, t_hw) f32
    c = pl.program_id(2)
    x = x_ref[0].astype(w1_ref.dtype)
    h = jnp.dot(w1_ref[...], x, preferred_element_type=jnp.float32)
    h = _gelu(h + b1_ref[...], approximate)
    # Dropout (p=0.1) is identity in eval mode.
    contrib = jnp.dot(
        w2_ref[...], h.astype(w2_ref.dtype), preferred_element_type=jnp.float32
    )

    @pl.when(c == 0)
    def _first():  # assign (no zero-init read-modify-write on the first chunk)
        acc_ref[...] = contrib

    @pl.when(c > 0)
    def _rest():
        acc_ref[...] += contrib

    @pl.when(c == pl.num_programs(2) - 1)
    def _finalize():
        o_ref[0] = (acc_ref[...] + b2_ref[...]).astype(o_ref.dtype)


# ----------------------------- planning --------------------------------------


def _vmem_budget_bytes():
    """3/4 of this chip's physical VMEM (96 MiB v5e/v6e, 48 MiB per-TC v7x)."""
    try:
        cap = pltpu.get_tpu_info().vmem_capacity_bytes
    except Exception:
        cap = 128 << 20
    return int(cap * 3 // 4)


def _plan_tiles(N, HW, dim, mlp_dim, x_item, out_item, budget, force_streaming):
    """Pick (t_hw, tc, resident) so the VMEM footprint fits the per-chip budget."""
    spend = budget * 0.9  # headroom for compiler temporaries / semaphores

    def thw_candidates():
        if HW <= 128:
            return [HW]
        cands = {t for t in (4096, 2048, 1024, 512, 256, 128) if t <= HW}
        if HW <= 4096 and HW % 128 == 0:
            cands.add(HW)
        return sorted(cands, reverse=True)

    def resident_fp(t):
        return (
            2 * dim * t * x_item          # x block (double-buffered)
            + 2 * dim * t * out_item      # out block (double-buffered)
            + 2 * 2 * mlp_dim * dim * x_item  # W1 + W2 (conservative x2 buffers)
            + 2 * (mlp_dim + dim) * 4     # biases (f32)
            + mlp_dim * t * 4             # GELU intermediate (f32)
            + dim * t * 4                 # second-matmul result (f32)
        )

    def streaming_fp(t, tc):
        return (
            2 * dim * t * x_item
            + 2 * dim * t * out_item
            + 2 * 2 * tc * dim * x_item   # W1/W2 chunks (double-buffered)
            + 2 * (tc + dim) * 4
            + tc * t * 4                  # h chunk (f32)
            + dim * t * 4                 # contrib (f32)
            + dim * t * 4                 # acc scratch (f32)
        )

    if not force_streaming:
        for t in thw_candidates():
            if resident_fp(t) <= spend:
                return t, mlp_dim, True

    for t in thw_candidates():
        for tc in (2048, 1024, 512, 256, 128):
            if tc >= mlp_dim:
                continue
            if streaming_fp(t, tc) <= spend:
                return t, tc, False
    # Last resort: smallest tiles.
    return thw_candidates()[-1], min(128, mlp_dim), False


def _resolve_compute_dtype(compute_dtype, dim, x_dtype):
    if compute_dtype is not None:
        return jnp.dtype(compute_dtype)
    # Auto: bf16 on the MXU (full rate, half the DMA) once channels are big enough
    # that the matmuls dominate; keep the input dtype for small dims.
    if dim >= 256:
        return jnp.dtype(jnp.bfloat16)
    return jnp.dtype(x_dtype)


# ----------------------------- wrapper ----------------------------------------


def mlp_forward(
    x_nchw,
    w1,
    b1,
    w2,
    b2,
    *,
    compute_dtype=None,
    approximate_gelu=False,
    force_streaming=False,
):
    """x_nchw: (N, dim, H, W); w1: (mlp_dim, dim); w2: (dim, mlp_dim) (conv orientation).

    compute_dtype: dtype fed to the MXU for activations/weights (auto: bf16 when
    dim >= 256).  Biases and accumulation always stay f32.
    approximate_gelu: use tanh-approx GELU (EUP fast path) instead of exact erf.
    """
    N, C, H, W = x_nchw.shape
    dim = C
    mlp_dim = w1.shape[0]
    HW = H * W
    out_dtype = x_nchw.dtype

    cdt = _resolve_compute_dtype(compute_dtype, dim, x_nchw.dtype)

    # NCHW is already channel-major: (N, dim, H*W) is a free reshape (no transpose),
    # and H*W lands on the fast lane axis.
    x3d = x_nchw.reshape(N, dim, HW).astype(cdt)
    w1c = w1.astype(cdt)
    w2c = w2.astype(cdt)
    b1c = b1.reshape(mlp_dim, 1).astype(jnp.float32)
    b2c = b2.reshape(dim, 1).astype(jnp.float32)

    x_item = jnp.dtype(cdt).itemsize
    out_item = jnp.dtype(out_dtype).itemsize
    budget = _vmem_budget_bytes()

    t_hw, tc, resident = _plan_tiles(
        N, HW, dim, mlp_dim, x_item, out_item, budget, force_streaming
    )

    # v7x megacore: make sure both TensorCores get at least one parallel tile.
    if N * pl.cdiv(HW, t_hw) < 2 and HW > 128:
        t_hw = max(128, ((pl.cdiv(HW, 2) + 127) // 128) * 128)

    grid_j = pl.cdiv(HW, t_hw)

    # Awkward mlp_dim in the streaming path: zero-pad the hidden dim (exact —
    # GELU(0 + 0) = 0 and padded W2 columns are 0) instead of keeping it resident.
    mlp_eff = mlp_dim
    if not resident and (mlp_dim % tc) != 0:
        mlp_eff = pl.cdiv(mlp_dim, tc) * tc
        pad = mlp_eff - mlp_dim
        w1c = jnp.pad(w1c, ((0, pad), (0, 0)))
        b1c = jnp.pad(b1c, ((0, pad), (0, 0)))
        w2c = jnp.pad(w2c, ((0, 0), (0, pad)))

    # HBM traffic estimate (includes weight re-reads when streaming).
    w_passes = 1 if resident else N * grid_j
    cost = pl.CostEstimate(
        flops=4 * N * HW * dim * mlp_dim,          # two matmuls, 2 flops/MAC
        transcendentals=N * HW * mlp_dim,          # one erf/tanh per hidden act
        bytes_accessed=(
            N * dim * HW * (x_item + out_item)
            + w_passes * 2 * mlp_eff * dim * x_item
            + (mlp_eff + dim) * 4
        ),
    )

    if resident:
        kernel = functools.partial(_mlp_kernel_resident, approximate=approximate_gelu)
        grid_spec = pltpu.PrefetchScalarGridSpec(
            num_scalar_prefetch=0,
            grid=(N, grid_j),
            in_specs=[
                pl.BlockSpec((1, dim, t_hw), lambda n, j: (n, 0, j)),   # x tile
                pl.BlockSpec((mlp_eff, dim), lambda n, j: (0, 0)),      # W1 resident
                pl.BlockSpec((mlp_eff, 1), lambda n, j: (0, 0)),        # b1 resident
                pl.BlockSpec((dim, mlp_eff), lambda n, j: (0, 0)),      # W2 resident
                pl.BlockSpec((dim, 1), lambda n, j: (0, 0)),            # b2 resident
            ],
            out_specs=pl.BlockSpec((1, dim, t_hw), lambda n, j: (n, 0, j)),
        )
        dim_sem = ("parallel", "parallel")
    else:
        kernel = functools.partial(_mlp_kernel_streaming, approximate=approximate_gelu)
        grid_c = mlp_eff // tc
        grid_spec = pltpu.PrefetchScalarGridSpec(
            num_scalar_prefetch=0,
            grid=(N, grid_j, grid_c),
            in_specs=[
                pl.BlockSpec((1, dim, t_hw), lambda n, j, c: (n, 0, j)),  # x tile
                pl.BlockSpec((tc, dim), lambda n, j, c: (c, 0)),          # W1 chunk
                pl.BlockSpec((tc, 1), lambda n, j, c: (c, 0)),            # b1 chunk
                pl.BlockSpec((dim, tc), lambda n, j, c: (0, c)),          # W2 chunk
                pl.BlockSpec((dim, 1), lambda n, j, c: (0, 0)),           # b2
            ],
            out_specs=pl.BlockSpec((1, dim, t_hw), lambda n, j, c: (n, 0, j)),
            scratch_shapes=[pltpu.VMEM((dim, t_hw), jnp.float32)],
        )
        dim_sem = ("parallel", "parallel", "arbitrary")

    out3d = pl.pallas_call(
        kernel,
        out_shape=jax.ShapeDtypeStruct((N, dim, HW), out_dtype),
        grid_spec=grid_spec,
        compiler_params=pltpu.CompilerParams(
            dimension_semantics=dim_sem,
            vmem_limit_bytes=budget,
        ),
        cost_estimate=cost,
    )(x3d, w1c, b1c, w2c, b2c)

    return out3d.reshape(N, dim, H, W)


# ----------------------------- reference & init --------------------------------


def init_params(key, dim, mlp_dim, dtype=jnp.float32):
    """Deterministic init mimicking nn.Conv2d defaults; conv-orientation weights."""
    k1, k2, k3, k4 = jax.random.split(key, 4)
    bound1 = 1.0 / math.sqrt(dim)       # fan_in of conv1 = dim * 1 * 1
    bound2 = 1.0 / math.sqrt(mlp_dim)   # fan_in of conv2 = mlp_dim * 1 * 1
    w1 = jax.random.uniform(k1, (mlp_dim, dim), dtype, -bound1, bound1)  # conv1.weight
    b1 = jax.random.uniform(k2, (mlp_dim,), dtype, -bound1, bound1)
    w2 = jax.random.uniform(k3, (dim, mlp_dim), dtype, -bound2, bound2)  # conv2.weight
    b2 = jax.random.uniform(k4, (dim,), dtype, -bound2, bound2)
    return w1, b1, w2, b2


def reference_forward(x_nchw, w1, b1, w2, b2, approximate_gelu=False):
    """Pure-JAX reference of the same math (eval-mode dropout)."""
    N, C, H, W = x_nchw.shape
    x = x_nchw.reshape(N, C, H * W).astype(jnp.float32)
    h = jnp.einsum("oc,ncs->nos", w1.astype(jnp.float32), x)
    h = _gelu(h + b1.astype(jnp.float32)[None, :, None], approximate_gelu)
    o = jnp.einsum("co,nos->ncs", w2.astype(jnp.float32), h)
    o = o + b2.astype(jnp.float32)[None, :, None]
    return o.reshape(N, C, H, W).astype(x_nchw.dtype)


if __name__ == "__main__":
    dim, mlp_dim = 4, 32
    N, H, W = 2, 16, 16

    key = jax.random.PRNGKey(0)
    kx, kp = jax.random.split(key)
    x = jax.random.normal(kx, (N, dim, H, W), jnp.float32)
    w1, b1, w2, b2 = init_params(kp, dim, mlp_dim)

    ref = reference_forward(x, w1, b1, w2, b2)

    # Default path: resident weights, exact erf GELU, f32 compute (dim < 256).
    out = mlp_forward(x, w1, b1, w2, b2)
    out = jax.block_until_ready(out)
    assert out.shape == (N, dim, H, W), out.shape
    assert jnp.allclose(out, ref, atol=1e-5, rtol=1e-5), float(jnp.max(jnp.abs(out - ref)))

    # Streaming fallback path (hidden-dim chunked): must match just as tightly.
    out_s = mlp_forward(x, w1, b1, w2, b2, force_streaming=True)
    out_s = jax.block_until_ready(out_s)
    assert jnp.allclose(out_s, ref, atol=1e-5, rtol=1e-5), float(
        jnp.max(jnp.abs(out_s - ref))
    )

    # bf16 compute path (MXU fast path for realistic dims): looser tolerance.
    out_bf16 = mlp_forward(x, w1, b1, w2, b2, compute_dtype=jnp.bfloat16)
    out_bf16 = jax.block_until_ready(out_bf16)
    assert jnp.allclose(out_bf16, ref, atol=5e-2, rtol=5e-2), float(
        jnp.max(jnp.abs(out_bf16 - ref))
    )

    # tanh-approx GELU fast path, compared against its own reference.
    ref_tanh = reference_forward(x, w1, b1, w2, b2, approximate_gelu=True)
    out_tanh = mlp_forward(x, w1, b1, w2, b2, approximate_gelu=True)
    out_tanh = jax.block_until_ready(out_tanh)
    assert jnp.allclose(out_tanh, ref_tanh, atol=1e-5, rtol=1e-5), float(
        jnp.max(jnp.abs(out_tanh - ref_tanh))
    )

    print("KERNEL_OK")
</pallas_src>

<mosaic_0001>
module attributes {stable_mosaic.version = 11 : i64} {
  func.func @_mlp_kernel_resident(%arg0: i32, %arg1: i32, %arg2: memref<1x4x256xf32, #tpu.memory_space<vmem>>, %arg3: memref<32x4xf32, #tpu.memory_space<vmem>>, %arg4: memref<32x1xf32, #tpu.memory_space<vmem>>, %arg5: memref<4x32xf32, #tpu.memory_space<vmem>>, %arg6: memref<4x1xf32, #tpu.memory_space<vmem>>, %arg7: memref<1x4x256xf32, #tpu.memory_space<vmem>>) attributes {dimension_semantics = [#tpu.dimension_semantics<parallel>, #tpu.dimension_semantics<parallel>], iteration_bounds = array<i64: 2, 1>, scalar_prefetch = 0 : i64, scratch_operands = 0 : i64, tpu.core_type = #tpu.core_type<tc>, window_params = [{transform_indices = @transform_0, window_bounds = array<i64: 1, 4, 256>}, {pipeline_mode = #tpu.pipeline_mode<synchronous>, transform_indices = @transform_1, window_bounds = array<i64: 32, 4>}, {pipeline_mode = #tpu.pipeline_mode<synchronous>, transform_indices = @transform_2, window_bounds = array<i64: 32, 1>}, {pipeline_mode = #tpu.pipeline_mode<synchronous>, transform_indices = @transform_3, window_bounds = array<i64: 4, 32>}, {pipeline_mode = #tpu.pipeline_mode<synchronous>, transform_indices = @transform_4, window_bounds = array<i64: 4, 1>}, {transform_indices = @transform_5, window_bounds = array<i64: 1, 4, 256>}]} {
    %c0 = arith.constant 0 : index
    %c0_0 = arith.constant 0 : index
    %c0_1 = arith.constant 0 : index
    %0 = vector.load %arg2[%c0, %c0_0, %c0_1] : memref<1x4x256xf32, #tpu.memory_space<vmem>>, vector<1x4x256xf32>
    %1 = vector.shape_cast %0 : vector<1x4x256xf32> to vector<4x256xf32>
    %c0_2 = arith.constant 0 : index
    %c0_3 = arith.constant 0 : index
    %2 = vector.load %arg3[%c0_2, %c0_3] : memref<32x4xf32, #tpu.memory_space<vmem>>, vector<32x4xf32>
    %cst = arith.constant dense<0.000000e+00> : vector<32x256xf32>
    %3 = tpu.matmul %2, %1, %cst {dimension_numbers = #tpu.dot_dimension_numbers<[1], [0], [0], [1], [0, 0, 1, 1], [], []>} : vector<32x4xf32>, vector<4x256xf32>, vector<32x256xf32> -> vector<32x256xf32>
    %c0_4 = arith.constant 0 : index
    %c0_5 = arith.constant 0 : index
    %4 = vector.load %arg4[%c0_4, %c0_5] : memref<32x1xf32, #tpu.memory_space<vmem>>, vector<32x1xf32>
    %5 = vector.broadcast %4 : vector<32x1xf32> to vector<32x256xf32>
    %6 = arith.addf %3, %5 : vector<32x256xf32>
    %cst_6 = arith.constant 5.000000e-01 : f32
    %7 = vector.broadcast %cst_6 : f32 to vector<32x256xf32>
    %8 = arith.mulf %7, %6 : vector<32x256xf32>
    %cst_7 = arith.constant 0.707106769 : f32
    %9 = vector.broadcast %cst_7 : f32 to vector<32x256xf32>
    %10 = arith.mulf %6, %9 : vector<32x256xf32>
    %11 = math.erf %10 : vector<32x256xf32>
    %cst_8 = arith.constant 1.000000e+00 : f32
    %12 = vector.broadcast %cst_8 : f32 to vector<32x256xf32>
    %13 = arith.addf %12, %11 : vector<32x256xf32>
    %14 = arith.mulf %8, %13 : vector<32x256xf32>
    %c0_9 = arith.constant 0 : index
    %c0_10 = arith.constant 0 : index
    %15 = vector.load %arg5[%c0_9, %c0_10] : memref<4x32xf32, #tpu.memory_space<vmem>>, vector<4x32xf32>
    %cst_11 = arith.constant dense<0.000000e+00> : vector<4x256xf32>
    %16 = tpu.matmul %15, %14, %cst_11 {dimension_numbers = #tpu.dot_dimension_numbers<[1], [0], [0], [1], [0, 0, 1, 1], [], []>} : vector<4x32xf32>, vector<32x256xf32>, vector<4x256xf32> -> vector<4x256xf32>
    %c0_12 = arith.constant 0 : index
    %c0_13 = arith.constant 0 : index
    %17 = vector.load %arg6[%c0_12, %c0_13] : memref<4x1xf32, #tpu.memory_space<vmem>>, vector<4x1xf32>
    %18 = vector.broadcast %17 : vector<4x1xf32> to vector<4x256xf32>
    %19 = arith.addf %16, %18 : vector<4x256xf32>
    %c0_14 = arith.constant 0 : index
    %c0_15 = arith.constant 0 : index
    %c0_16 = arith.constant 0 : index
    %20 = vector.load %arg7[%c0_14, %c0_15, %c0_16] : memref<1x4x256xf32, #tpu.memory_space<vmem>>, vector<1x4x256xf32>
    %21 = vector.shape_cast %20 : vector<1x4x256xf32> to vector<4x256xf32>
    %22 = vector.shape_cast %19 : vector<4x256xf32> to vector<1x4x256xf32>
    tpu.vector_store %arg7[%c0_14, %c0_15, %c0_16], %22 {strides = array<i32>} : memref<1x4x256xf32, #tpu.memory_space<vmem>>, vector<1x4x256xf32>,
    return
  }
  func.func @transform_0(%arg0: i32, %arg1: i32) -> (i32, i32, i32) {
    %c0_i32 = arith.constant 0 : i32
    %c0_i32_0 = arith.constant 0 : i32
    return %arg0, %c0_i32, %arg1 : i32, i32, i32
  }
  func.func @transform_1(%arg0: i32, %arg1: i32) -> (i32, i32) {
    %c0_i32 = arith.constant 0 : i32
    %c0_i32_0 = arith.constant 0 : i32
    %c0_i32_1 = arith.constant 0 : i32
    return %c0_i32, %c0_i32_0 : i32, i32
  }
  func.func @transform_2(%arg0: i32, %arg1: i32) -> (i32, i32) {
    %c0_i32 = arith.constant 0 : i32
    %c0_i32_0 = arith.constant 0 : i32
    %c0_i32_1 = arith.constant 0 : i32
    return %c0_i32, %c0_i32_0 : i32, i32
  }
  func.func @transform_3(%arg0: i32, %arg1: i32) -> (i32, i32) {
    %c0_i32 = arith.constant 0 : i32
    %c0_i32_0 = arith.constant 0 : i32
    %c0_i32_1 = arith.constant 0 : i32
    return %c0_i32, %c0_i32_0 : i32, i32
  }
  func.func @transform_4(%arg0: i32, %arg1: i32) -> (i32, i32) {
    %c0_i32 = arith.constant 0 : i32
    %c0_i32_0 = arith.constant 0 : i32
    %c0_i32_1 = arith.constant 0 : i32
    return %c0_i32, %c0_i32_0 : i32, i32
  }
  func.func @transform_5(%arg0: i32, %arg1: i32) -> (i32, i32, i32) {
    %c0_i32 = arith.constant 0 : i32
    %c0_i32_0 = arith.constant 0 : i32
    return %arg0, %c0_i32, %arg1 : i32, i32, i32
  }
}

</mosaic_0001>

<bundles_post_ra>
// kernel: tpu_custom_call.1
= control target key start
LH: loop header
LB: loop body
LE: loop exit
PB: predicated region body
PF: predicated region fallthrough
CT: control target
= control target key end

     0   :  { %10 = vsyncpa [#allocation3], 0  ;;  %s1468_s0 = inlined_call_operand.hbm [shape: f32[2,4,256], index: 0, kind: input, shape index: {}]   ;;  %s1469_s1 = inlined_call_operand.hbm [shape: f32[32,4], index: 1, kind: input, shape index: {}]   ;;  %s1470_s2 = inlined_call_operand.hbm [shape: f32[32,1], index: 2, kind: input, shape index: {}]   ;;  %s1471_s3 = inlined_call_operand.hbm [shape: f32[4,32], index: 3, kind: input, shape index: {}]   ;;  %s1472_s4 = inlined_call_operand.hbm [shape: f32[4,1], index: 4, kind: input, shape index: {}]   ;;  %s1473_s5 = inlined_call_operand.hbm [shape: f32[2,4,256], index: 5, kind: output, shape index: {}]  }
   0x1   :  { %12 = vsyncpa [#allocation3 + $0x1], 0 }
   0x2   :  { %13 = vsyncpa [#allocation6], 0 }
   0x3   :  { %14 = vsyncpa [#allocation9], 0 }
   0x4   :  { %15 = vsyncpa [#allocation4], 0 }
   0x5   :  { %17 = vsyncpa [#allocation4 + $0x1], 0  ;;  %s1159_s18 = smov 0   ;;  %s1161_s19 = smov 0  }
   0x6   :  { %s1163_s20 = smov 0   ;;  %s1165_s21 = smov 0  }
   0x7   :  { %s1167_s22 = smov 0   ;;  %s1169_s23 = smov 0  }
   0x8 LB: > { %s719_s24 = sadd.s32 4294967295, %s1117_s23   ;;  %p721_p0 = scmp.ge.s32.totalorder %s1117_s23, 1  ;;  %s1117_s23 = sphi %s1169_s23, %s23_s23   ;;  %s1113_s22 = sphi %s1167_s22, %s1497_s22   ;;  %s1109_s21 = sphi %s1165_s21, %s1496_s21   ;;  %s1105_s20 = sphi %s1163_s20, %s1495_s20   ;;  %s1101_s19 = sphi %s1161_s19, %s1494_s19   ;;  %s1097_s18 = sphi %s1159_s18, %s1493_s18  }
   0x9   : > { %p1193_p1 = scmp.eq.s32.totalorder %s719_s24, 0  ;;  %p180_p2 = scmp.lt.s32.totalorder %s1117_s23, 3 }
   0xa   : > { %s1119_s27 = smov [#allocation5]   ;;  %s1120_s30 = smov [#allocation8]  }
   0xb   : > { %s1478_s25 = scalar_select %p1193_p1, 1, 0 }
   0xc   : > { %p1198_p3 = pnand %p721_p0, %p180_p2  ;;  %s192_s28 = sshll.u32 %s1119_s27, 4  ;;  %s1202_s28 = int_to_ptr.vmem [resolvable:$true] %s192_s28 }
   0xd   : > { %s219_s6 = sshll.u32 %s1120_s30, 4  ;;  %s1121_s7 = smov [#allocation7]   ;;  %s1213_s6 = int_to_ptr.vmem [resolvable:$true] %s219_s6 }
   0xe   : > { %s1479_s26 = scalar_select %p1198_p3, 1, 0 }
   0xf   : > { %p779_p4 = pneg %p1198_p3  ;;  %s1215_s8 = sshll.u32 %s1121_s7, 4  ;;  %s206_s8 = int_to_ptr.vmem [resolvable:$true] %s1215_s8 }
  0x10   : > { %s885_s11 = scalar_lea.hbm %s1469_s1, 512 }
  0x11   : > { %p1209_p6 = pnand %p779_p4, %p1193_p1  ;;  %p886_p7 = scmp.ne.s32.totalorder %s1469_s1, %s885_s11 }
  0x12   : > { %p892_p11 = scmp.lt.u32.totalorder %s885_s11, %s1469_s1 }
  0x13   : > { %p1225_p8 = pneg %p1209_p6 }
  0x15   : > { %p888_p9 = pnand %p1225_p8, %p886_p7 }
  0x17   : > { %p889_p10 = pneg %p888_p9 }
  0x19   : > { %p894_p12 = pnand %p892_p11, %p889_p10 }
  0x1b   : > { %897 = shalt.err (!%p894_p12)
}
  0x1c   : > { %s898_s17 = scalar_lea.vmem %s1202_s28, 512  ;;  %p906_p4 = scmp.lt.s32.totalorder %s1202_s28, %s1202_s28 }
  0x1d   : > { %p899_p13 = scmp.ne.s32.totalorder %s1202_s28, %s898_s17  ;;  %p907_p5 = scmp.lt.s32.totalorder %s898_s17, %s898_s17 }
  0x1f   : > { %p901_p0 = pnand %p899_p13, %p1225_p8  ;;  %p908_p7 = por %p907_p5, %p906_p4 }
  0x21   : > { %p902_p2 = pneg %p901_p0 }
  0x23   : > { %p909_p9 = pnand %p908_p7, %p902_p2 }
  0x25   : > { %912 = shalt.err (!%p909_p9)
}
  0x26   : > { %s1122_s27 = smov 128   ;;  %s1123_s30 = smov 8  }
  0x27   : > { %782 = dma.hbm_to_vmem [thread:$0]  (!%p1209_p6), %s1469_s1, 512, %s1202_s28, [#allocation6], %s1122_s27, %s1122_s27, %s1123_s30  }
  0x28   : > { %s913_s12 = scalar_lea.hbm %s1471_s3, 64 }
  0x29   : > { %p914_p5 = scmp.ne.s32.totalorder %s1471_s3, %s913_s12  ;;  %p920_p12 = scmp.lt.u32.totalorder %s913_s12, %s1471_s3 }
  0x2b   : > { %p916_p10 = pnand %p914_p5, %p1225_p8 }
  0x2d   : > { %p917_p11 = pneg %p916_p10 }
  0x2f   : > { %p922_p13 = pnand %p920_p12, %p917_p11 }
  0x31   : > { %925 = shalt.err (!%p922_p13)
}
  0x32   : > { %s926_s28 = scalar_lea.vmem %s1213_s6, 64  ;;  %p934_p7 = scmp.lt.s32.totalorder %s1213_s6, %s1213_s6 }
  0x33   : > { %p927_p0 = scmp.ne.s32.totalorder %s1213_s6, %s926_s28  ;;  %p935_p9 = scmp.lt.s32.totalorder %s926_s28, %s926_s28 }
  0x35   : > { %p929_p2 = pnand %p927_p0, %p1225_p8  ;;  %p936_p5 = por %p935_p9, %p934_p7 }
  0x37   : > { %p930_p4 = pneg %p929_p2 }
  0x39   : > { %p937_p10 = pnand %p936_p5, %p930_p4 }
  0x3b   : > { %940 = shalt.err (!%p937_p10)
}
  0x3c   : > { %788 = dma.hbm_to_vmem [thread:$0]  (!%p1209_p6), %s1471_s3, 64, %s1213_s6, [#allocation9]  }
  0x3d   : > { %s941_s12 = scalar_lea.hbm %s1470_s2, 512 }
  0x3e   : > { %p942_p11 = scmp.ne.s32.totalorder %s1470_s2, %s941_s12  ;;  %p948_p0 = scmp.lt.u32.totalorder %s941_s12, %s1470_s2 }
  0x40   : > { %p944_p12 = pnand %p942_p11, %p1225_p8 }
  0x42   : > { %p945_p13 = pneg %p944_p12 }
  0x44   : > { %p950_p2 = pnand %p948_p0, %p945_p13 }
  0x46   : > { %953 = shalt.err (!%p950_p2)
}
  0x47   : > { %s954_s28 = scalar_lea.vmem %s206_s8, 512  ;;  %p962_p5 = scmp.lt.s32.totalorder %s206_s8, %s206_s8 }
  0x48   : > { %p955_p4 = scmp.ne.s32.totalorder %s206_s8, %s954_s28  ;;  %p963_p10 = scmp.lt.s32.totalorder %s954_s28, %s954_s28 }
  0x4a   : > { %p957_p7 = pnand %p955_p4, %p1225_p8  ;;  %p964_p3 = por %p963_p10, %p962_p5 }
  0x4c   : > { %p958_p9 = pneg %p957_p7 }
  0x4e   : > { %p965_p1 = pnand %p964_p3, %p958_p9 }
  0x50   : > { %968 = shalt.err (!%p965_p1)
}
  0x51   : > { %785 = dma.hbm_to_vmem [thread:$0]  (!%p1209_p6), %s1470_s2, 512, %s206_s8, [#allocation6], %s1122_s27, %s1122_s27, %s1123_s30  }
  0x52   : > { %s1124_s9 = smov [#allocation10]   ;;  %s969_s13 = scalar_lea.hbm %s1472_s4, 64 }
  0x53   : > { %s230_s10 = sshll.u32 %s1124_s9, 4  ;;  %p970_p1 = scmp.ne.s32.totalorder %s1472_s4, %s969_s13  ;;  %s231_s10 = int_to_ptr.vmem [resolvable:$true] %s230_s10 }
  0x54   : > { %p976_p12 = scmp.lt.u32.totalorder %s969_s13, %s1472_s4 }
  0x55   : > { %p972_p3 = pnand %p970_p1, %p1225_p8 }
  0x57   : > { %p973_p11 = pneg %p972_p3 }
  0x59   : > { %p978_p13 = pnand %p976_p12, %p973_p11 }
  0x5b   : > { %981 = shalt.err (!%p978_p13)
}
  0x5c   : > { %s982_s8 = scalar_lea.vmem %s231_s10, 64  ;;  %p990_p7 = scmp.lt.s32.totalorder %s231_s10, %s231_s10 }
  0x5d   : > { %p983_p0 = scmp.ne.s32.totalorder %s231_s10, %s982_s8  ;;  %p991_p9 = scmp.lt.s32.totalorder %s982_s8, %s982_s8 }
  0x5f   : > { %p985_p2 = pnand %p983_p0, %p1225_p8  ;;  %p992_p5 = por %p991_p9, %p990_p7 }
  0x61   : > { %p986_p4 = pneg %p985_p2 }
  0x63   : > { %p993_p10 = pnand %p992_p5, %p986_p4 }
  0x65   : > { %996 = shalt.err (!%p993_p10)
}
  0x66   : > { %791 = dma.hbm_to_vmem [thread:$0]  (!%p1209_p6), %s1472_s4, 64, %s231_s10, [#allocation9]  }
  0x67   : > { %s720_s14 = sadd.s32 4294967294, %s1117_s23   ;;  %s35_s6 = sadd.s32 1, %s1113_s22 }
  0x68   : > { %p37_p8 = scmp.ge.s32.totalorder %s35_s6, 2  ;;  %s44_s29 = sadd.s32 1, %s1105_s20 }
  0x69   : > { %p51_p1 = scmp.ne.s32.totalorder %s1105_s20, %s1101_s19  ;;  %p52_p3 = scmp.eq.s32.totalorder %s1117_s23, 0 }
  0x6a   : > { %s1499_s6 = smov (%p37_p8, %s35_s6), 0  ;;  %p57_p12 = scmp.ne.s32.totalorder %s1101_s19, %s1097_s18 }
  0x6b   : > { %p1320_p11 = por %p52_p3, %p51_p1  ;;  %s39_s9 = ssub.s32 %s1113_s22, %s1499_s6 }
  0x6c   : > { %p167_p6 = scmp.eq.s32.totalorder %s719_s24, 1  ;;  %p42_p13 = scmp.eq.s32.totalorder %s39_s9, 0 }
  0x6d   : > { %p1483_p0 = scmp.ne.s32.totalorder %s1478_s25, 0  ;;  %p173_p7 = scmp.eq.s32.totalorder %s720_s14, 1 }
  0x6e   : > { %p1336_p4 = por %p167_p6, %p51_p1  ;;  %p804_p5 = scmp.lt.s32.totalorder %s1117_s23, 2 }
  0x6f   : > { %p1332_p2 = por %p1483_p0, %p57_p12  ;;  %p1343_p9 = por %p173_p7, %p57_p12 }
  0x70   : > { %s1485_s11 = scalar_select %p1336_p4, 1, 0 }
  0x71   : > { %s1341_s12 = scalar_select %p42_p13, %s1105_s20, %s44_s29  }
  0x72   : > { %s1486_s13 = scalar_select %p1343_p9, 1, 0 }
  0x73   : > { %s241_s15 = sand.u32 1, %s1105_s20   ;;  %s749_s24 = sshll.u32 %s1113_s22, 7 }
  0x74   : > { %s727_s16 = sshll.u32 %s241_s15, 3  ;;  %s1353_s8 = scalar_lea.hbm %s1468_s0, %s749_s24 }
  0x75   : > { %s245_s27 = scalar_lea.vmem [#allocation2], %s727_s16  ;;  %p1357_p10 = pnand %p804_p5, %p1320_p11 }
  0x76   : > { %s255_s30 = sshll.u32 %s245_s27, 4  ;;  %s242_s29 = scalar_lea.sflag [#allocation3], %s241_s15  ;;  %s1361_s30 = int_to_ptr.vmem [resolvable:$true] %s255_s30 }
  0x77   : > { %s997_s9 = scalar_lea.hbm %s1353_s8, 128  ;;  %p999_p1 = pneg %p1357_p10 }
  0x78   : > { %p998_p8 = scmp.ne.s32.totalorder %s1353_s8, %s997_s9  ;;  %s1002_s7 = scalar_lea.hbm %s1468_s0, 256 }
  0x79   : > { %p1003_p11 = scmp.lt.u32.totalorder %s1353_s8, %s1468_s0  ;;  %p1004_p6 = scmp.lt.u32.totalorder %s1002_s7, %s997_s9 }
  0x7a   : > { %p1000_p3 = pnand %p999_p1, %p998_p8  ;;  %p1006_p0 = scmp.lt.u32.totalorder %s997_s9, %s1353_s8 }
  0x7b   : > { %p1005_p13 = por %p1004_p6, %p1003_p11 }
  0x7c   : > { %p1001_p12 = pneg %p1000_p3 }
  0x7d   : > { %p1007_p7 = por %p1006_p0, %p1005_p13 }
  0x7f   : > { %p1008_p5 = pnand %p1007_p7, %p1001_p12 }
  0x81   : > { %1011 = shalt.err (!%p1008_p5)
}
  0x82   : > { %s1012_s15 = scalar_lea.vmem %s1361_s30, 128  ;;  %s1125_s27 = smov [#allocation2]  }
  0x83   : > { %p1013_p8 = scmp.ne.s32.totalorder %s1361_s30, %s1012_s15  ;;  %s1017_s24 = sshll.u32 %s1125_s27, 4  ;;  %s1018_s24 = int_to_ptr.vmem [resolvable:$false] %s1017_s24 }
  0x84   : > { %s1019_s16 = scalar_lea.vmem %s1018_s24, 256  ;;  %p1020_p4 = scmp.lt.s32.totalorder %s1361_s30, %s1018_s24 }
  0x85   : > { %p1015_p3 = pnand %p1013_p8, %p999_p1  ;;  %p1021_p11 = scmp.lt.s32.totalorder %s1019_s16, %s1012_s15 }
  0x87   : > { %p1016_p9 = pneg %p1015_p3  ;;  %p1022_p6 = por %p1021_p11, %p1020_p4 }
  0x89   : > { %p1023_p13 = pnand %p1022_p6, %p1016_p9 }
  0x8b   : > { %1026 = shalt.err (!%p1023_p13)
}
  0x8c   : > { %795 = dma.hbm_to_vmem [thread:$0]  (!%p1357_p10), %s1353_s8, 128, %s1361_s30, %s242_s29  }
  0x8d   : > { %p1488_p12 = scmp.ne.s32.totalorder %s1479_s26, 0 }
  0x8e   : > { %s1391_s9 = sand.u32 (!%p1488_p12), 1, %s1101_s19  }
  0x8f   : > { %264 = sbr.rel (%p1488_p12) target bundleno = 642 (0x282), region = 40  ;;  %s731_s7 = sshll.u32 (!%p1488_p12), %s1391_s9, 3 }
  0x90   : > { %s267_s17 = scalar_lea.sflag (!%p1488_p12), [#allocation3], %s1391_s9  ;;  %s270_s28 = scalar_lea.vmem (!%p1488_p12), [#allocation2], %s731_s7 }
  0x96   : > { %1080 = dma.done.wait (%p1332_p2), %s267_s17, 128  }
  0x97   : > { %1082 = vsyncadd (%p1332_p2), %s267_s17, 4294967168  ;;  %p1489_p4 = scmp.ne.s32.totalorder %s1478_s25, 0 }
  0x99   : > { %1084 = dma.done.wait (%p1489_p4), [#allocation6], 1024  }
  0x9a   : > { %1086 = vsyncadd (%p1489_p4), [#allocation6], 4294966272 }
  0x9b   : > { %1088 = dma.done.wait (%p1489_p4), [#allocation9], 128  }
  0x9c   : > { %1090 = vsyncadd (%p1489_p4), [#allocation9], 4294967168  ;;  %v1126_v0 = vmov 0.0   ;;  %v1127_v1 = vmov 0   ;;  %v315_v2 = vld [vmem:[%s270_s28] sm:$0xff]  ;;  %vm359_vm0 = vcmask 1043456  }
  0x9d   : > { %428 = vmatprep.mubr.f32.mxu0 %v1126_v0  ;;  %866 = vset.pattern.permute.xlu0 %v1127_v1  ;;  %v345_v3 = vcombine.high %v315_v2, %v315_v2  ;;  %v320_v4 = vld [vmem:[#allocation7] sm:$0xff]  ;;  %vm346_vm1 = vcmask 31744   ;;  %v322_v6 = vld [vmem:[#allocation7 + $0x10] sm:$0xff]  ;;  %v321_v7 = vld [vmem:[#allocation7 + $0x8] sm:$0xff]  ;;  %vm500_vm2 = vcmask 261120   ;;  %s750_s25 = sshll.u32 %s1109_s21, 7 }
  0x9e   : > { %867 = vset.pattern.permute.xlu1 %v1127_v1  ;;  %568 = vmatprep.mubr.f32.mxu1 %v1126_v0  ;;  %v316_v5 = vld [vmem:[#allocation5] sm:$0xff]  ;;  %v323_v8 = vld [vmem:[#allocation7 + $0x18] sm:$0xff]  ;;  %v317_v9 = vld [vmem:[#allocation5 + $0x8] sm:$0xff]  ;;  %s312_s26 = scalar_lea.vmem [#allocation11], %s731_s7  ;;  %s1419_s14 = scalar_lea.hbm %s1473_s5, %s750_s25 }
  0x9f   : > { %326 = vperm.xlu0 %866, %v320_v4   ;;  %737 = vmatprep.subr.msk.mxu0 %vm359_vm0, %v345_v3  ;;  %v494_v10 = vld [vmem:[#allocation10] sm:$0xf]  ;;  %v318_v11 = vld [vmem:[#allocation5 + $0x10] sm:$0xff]  ;;  %v319_v12 = vld [vmem:[#allocation5 + $0x18] sm:$0xff]  ;;  %s597_s10 = sshll.u32 %s312_s26, 4  ;;  %s581_s29 = scalar_lea.sflag [#allocation4], %s1391_s9  ;;  %s1421_s10 = int_to_ptr.vmem [resolvable:$true] %s597_s10 }
  0xa0   : > { %336 = vperm.xlu1 %867, %v322_v6   ;;  %738 = vmatpush1.msk.msra.mxu0 %vm359_vm0, %v315_v2  ;;  %s1027_s15 = scalar_lea.vmem %s1421_s10, 128  ;;  %p1490_p9 = scmp.ne.s32.totalorder %s1485_s11, 0 }
  0xa1   : > { %739 = vmatmul.mubr.msk.f32.vlgmr.msra.gmra.mrb[0].mxu0 %vm346_vm1, %v316_v5  ;;  %p1028_p2 = scmp.ne.s32.totalorder %s1421_s10, %s1027_s15  ;;  %s1128_s21 = smov [#allocation11]  }
  0xa2   : > { %434 = vmatprep.mubr.f32.mxu0 %v1126_v0  ;;  %s1031_s27 = sshll.u32 %s1128_s21, 4  ;;  %s1032_s27 = int_to_ptr.vmem [resolvable:$false] %s1031_s27 }
  0xa3   : > { %331 = vperm.xlu0 %866, %v321_v7   ;;  %p1029_p10 = pnand %p1028_p2, %p1490_p9  ;;  %s1033_s24 = scalar_lea.vmem %s1032_s27, 256 }
  0xa4   : > { %341 = vperm.xlu1 %867, %v323_v8   ;;  %p1034_p0 = scmp.lt.s32.totalorder %s1421_s10, %s1032_s27  ;;  %p1035_p7 = scmp.lt.s32.totalorder %s1033_s24, %s1027_s15 }
  0xa5   : > { %740 = vmatmul.mubr.msk.f32.gmra.mrb[2].mxu0 %vm346_vm1, %v317_v9  ;;  %p1030_p1 = pneg %p1029_p10 }
  0xa6   : > { %440 = vmatprep.mubr.f32.mxu0 %v1126_v0  ;;  %p1036_p5 = por %p1035_p7, %p1034_p0 }
  0xa7   : > { %497 = vperm.xlu0 %866, %v494_v10  }
  0xa8   : > { %p1037_p8 = pnand %p1036_p5, %p1030_p1 }
  0xa9   : > { %741 = vmatmul.mubr.msk.f32.gmra.mrb[4].mxu0 %vm346_vm1, %v318_v11 }
  0xaa   : > { %446 = vmatprep.mubr.f32.mxu0 %v1126_v0 }
  0xad   : > { %742 = vmatmul.mubr.msk.f32.gmra.mrb[6].mxu0 %vm346_vm1, %v319_v12 }
 0x11e   : > { %v327_v13 = vpop.permute.xlu0 %326 }
 0x11f   : > { %v337_v24 = vpop.permute.xlu1 %336 }
 0x122   : > { %v332_v19 = vpop.permute.xlu0 %331 }
 0x123   : > { %v342_v33 = vpop.permute.xlu1 %341 }
 0x174   : > { %v430_v14 = vpop.f32.mrb[0].mxu0 }
 0x175   : > { %v431_v15 = vadd.f32 %v430_v14, %v327_v13  ;;  %v432_v16 = vpop.f32.mrb[1].mxu0  ;;  %v498_v14 = vpop.permute.xlu0 %497 }
 0x176   : > { %v433_v17 = vadd.f32 %v432_v16, %v327_v13  ;;  %v493_v13 = vld [vmem:[#allocation8] sm:$0xf] }
 0x177   : > { %v461_v18 = vmul.f32 0.70710677, %v431_v15  ;;  %v453_v47 = vmul.f32 0.5, %v431_v15 }
 0x178   : > { %v462_v20 = vmul.f32 0.70710677, %v433_v17  ;;  %v436_v21 = vpop.f32.mrb[2].mxu0  ;;  %v454_v50 = vmul.f32 0.5, %v433_v17 }
 0x179   : > { %869 = verf.f32 %v461_v18  ;;  %v437_v22 = vadd.f32 %v436_v21, %v332_v19  ;;  %v438_v23 = vpop.f32.mrb[3].mxu0 }
 0x17a   : > { %871 = verf.f32 %v462_v20  ;;  %v439_v25 = vadd.f32 %v438_v23, %v332_v19 }
 0x17b   : > { %v463_v26 = vmul.f32 0.70710677, %v437_v22  ;;  %v455_v48 = vmul.f32 0.5, %v437_v22 }
 0x17c   : > { %v464_v27 = vmul.f32 0.70710677, %v439_v25  ;;  %v442_v28 = vpop.f32.mrb[4].mxu0  ;;  %v456_v51 = vmul.f32 0.5, %v439_v25 }
 0x17d   : > { %873 = verf.f32 %v463_v26  ;;  %v443_v29 = vadd.f32 %v442_v28, %v337_v24  ;;  %v444_v30 = vpop.f32.mrb[5].mxu0 }
 0x17e   : > { %875 = verf.f32 %v464_v27  ;;  %v445_v31 = vadd.f32 %v444_v30, %v337_v24 }
 0x17f   : > { %v465_v32 = vmul.f32 0.70710677, %v443_v29  ;;  %v457_v1 = vmul.f32 0.5, %v443_v29 }
 0x180   : > { %v466_v34 = vmul.f32 0.70710677, %v445_v31  ;;  %v448_v35 = vpop.f32.mrb[6].mxu0  ;;  %v458_v4 = vmul.f32 0.5, %v445_v31 }
 0x181   : > { %877 = verf.f32 %v465_v32  ;;  %v449_v36 = vadd.f32 %v448_v35, %v342_v33  ;;  %v450_v37 = vpop.f32.mrb[7].mxu0 }
 0x182   : > { %879 = verf.f32 %v466_v34  ;;  %v451_v38 = vadd.f32 %v450_v37, %v342_v33 }
 0x183   : > { %v870_v39 = vpop.eup %869  ;;  %v467_v40 = vmul.f32 0.70710677, %v449_v36  ;;  %v459_v2 = vmul.f32 0.5, %v449_v36 }
 0x184   : > { %v872_v41 = vpop.eup %871  ;;  %v468_v42 = vmul.f32 0.70710677, %v451_v38  ;;  %v477_v43 = vadd.f32 1.0, %v870_v39  ;;  %v460_v5 = vmul.f32 0.5, %v451_v38 }
 0x185   : > { %881 = verf.f32 %v467_v40  ;;  %v478_v45 = vadd.f32 1.0, %v872_v41 }
 0x186   : > { %883 = verf.f32 %v468_v42  ;;  %v485_v53 = vmul.f32 %v477_v43, %v453_v47 }
 0x187   : > { %v874_v44 = vpop.eup %873  ;;  %v486_v56 = vmul.f32 %v478_v45, %v454_v50 }
 0x188   : > { %v876_v46 = vpop.eup %875  ;;  %v479_v49 = vadd.f32 1.0, %v874_v44 }
 0x189   : > { %v480_v52 = vadd.f32 1.0, %v876_v46 }
 0x18a   : > { %v487_v54 = vmul.f32 %v479_v49, %v455_v48 }
 0x18b   : > { %v878_v55 = vpop.eup %877  ;;  %v488_v57 = vmul.f32 %v480_v52, %v456_v51 }
 0x18c   : > { %v880_v58 = vpop.eup %879  ;;  %v753_v59 = vpack.c.bf16 %v487_v54, %v485_v53  ;;  %v481_v61 = vadd.f32 1.0, %v878_v55 }
 0x18d   : > { %v751_v60 = vpack.c.bf16 %v488_v57, %v486_v56  ;;  %v482_v63 = vadd.f32 1.0, %v880_v58 }
 0x18e   : > { %v489_v7 = vmul.f32 %v481_v61, %v457_v1 }
 0x18f   : > { %v882_v62 = vpop.eup %881  ;;  %752 = vmatprep.subr.bf16.mxu1 %v751_v60  ;;  %v490_v9 = vmul.f32 %v482_v63, %v458_v4 }
 0x190   : > { %v884_v0 = vpop.eup %883  ;;  %v483_v3 = vadd.f32 1.0, %v882_v62  ;;  %754 = vmatpush1.bf16.msra.mxu1 %v753_v59 }
 0x191   : > { %v484_v6 = vadd.f32 1.0, %v884_v0 }
 0x192   : > { %v491_v8 = vmul.f32 %v483_v3, %v459_v2 }
 0x193   : > { %v492_v10 = vmul.f32 %v484_v6, %v460_v5 }
 0x194   : > { %v757_v11 = vpack.c.bf16 %v491_v8, %v489_v7 }
 0x195   : > { %v755_v12 = vpack.c.bf16 %v492_v10, %v490_v9 }
 0x197   : > { %756 = vmatprep.subr.bf16.mxu1 %v755_v12 }
 0x198   : > { %758 = vmatpush1.bf16.msra.mxu1 %v757_v11 }
 0x19b   : > { %743 = vmatmul.mubr.msk.f32.vlgmr.msra.gmra.mrb[0].mxu1 %vm500_vm2, %v493_v13 }
 0x26e   : > { %v570_v15 = vpop.f32.mrb[0].mxu1 }
 0x26f   : > { %v571_v16 = vadd.f32 %v570_v15, %v498_v14  ;;  %v572_v17 = vpop.f32.mrb[1].mxu1 }
 0x270   : > { %v573_v18 = vadd.f32 %v572_v17, %v498_v14 }
 0x272   : > { %v577_v19 = vcombine.low %v571_v16, %v573_v18 }
 0x274   : > { %579 = vst [vmem:[%s312_s26] sm:$0xff] %v577_v19 }
 0x275   : > { %1040 = shalt.err (!%p1037_p8)
}
 0x276   : > { %s1041_s16 = scalar_lea.hbm %s1419_s14, 128  ;;  %s1045_s17 = scalar_lea.hbm %s1473_s5, 256 }
 0x277   : > { %p1042_p3 = scmp.ne.s32.totalorder %s1419_s14, %s1041_s16  ;;  %p1046_p13 = scmp.lt.u32.totalorder %s1419_s14, %s1473_s5 }
 0x278   : > { %p1047_p12 = scmp.lt.u32.totalorder %s1045_s17, %s1041_s16  ;;  %p1049_p2 = scmp.lt.u32.totalorder %s1041_s16, %s1419_s14 }
 0x279   : > { %p1043_p11 = pnand %p1042_p3, %p1490_p9 }
 0x27a   : > { %p1048_p4 = por %p1047_p12, %p1046_p13 }
 0x27b   : > { %p1044_p6 = pneg %p1043_p11 }
 0x27c   : > { %p1050_p10 = por %p1049_p2, %p1048_p4 }
 0x27e   : > { %p1051_p1 = pnand %p1050_p10, %p1044_p6 }
 0x280   : > { %1054 = shalt.err (!%p1051_p1)
}
 0x281   : > { %777 = dma.vmem_to_hbm [thread:$0]  (%p1490_p9), %s1421_s10, 128, %s1419_s14, %s581_s29  }
 0x282 PF: > { %s609_s26 = sand.u32 1, %s1097_s18   ;;  %p1491_p0 = scmp.ne.s32.totalorder %s1486_s13, 0 }
 0x283   : > { %p1492_p7 = scmp.ge.s32.totalorder %s1117_s23, 2  ;;  %s610_s8 = scalar_lea.sflag [#allocation4], %s609_s26 }
 0x285   : > { %p797_p5 = pnand %p1492_p7, %p1491_p0 }
 0x287   : > { %1092 = dma.done.wait (!%p797_p5), %s610_s8, 128  }
 0x288   : > { %1094 = vsyncadd (!%p797_p5), %s610_s8, 4294967168  ;;  %s23_s23 = sadd.s32 1, %s1117_s23   ;;  %s1493_s18 = smov %s1101_s19 }
 0x289   : > { %p20_p8 = scmp.ge.s32.totalorder %s23_s23, 4   ;;  %s1494_s19 = smov %s1105_s20 }
 0x28a   : > { %s1495_s20 = smov %s1341_s12  ;;  %s1496_s21 = smov %s1113_s22 }
 0x28b   : > { %s1497_s22 = smov %s1499_s6  ;;  %22 = sbr.rel (!%p20_p8) target bundleno = 8 (0x8), region = 101 }
 0x292   :  { %615 = vsyncpa [#allocation3], 1 }
 0x293   :  { %617 = vsyncpa [#allocation3 + $0x1], 1 }
 0x294   :  { %618 = vsyncpa [#allocation6], 1 }
 0x295   :  { %619 = vsyncpa [#allocation9], 1 }
 0x296   :  { %620 = vsyncpa [#allocation4], 1 }
 0x297   :  { %622 = vsyncpa [#allocation4 + $0x1], 1 }

</bundles_post_ra>
